<compile_context>
chip_gen: v7x
topology: tpu7x:2x2x1
jax: 0.10.0
libtpu: 0.0.40
codegen_flags: <defaults>
</compile_context>

<pallas_src>
import math
from functools import partial

import jax
import jax.numpy as jnp
from jax.experimental import pallas as pl
from jax.experimental.pallas import tpu as pltpu

_LANE = 128
_SUBLANE = 8


def _round_up(x, m):
    return ((x + m - 1) // m) * m


# ----------------------------------------------------------------------------
# Fused kernel: span-field sigmoid head (per grid step) + doc-event head (once)
# ----------------------------------------------------------------------------
def _fused_kernel(q_ref, ctx_ref, w_e_ref, b_e_ref,
                  span_ref, w_f_ref, b_f_ref,
                  doc_out_ref, span_out_ref):
    # ---- span branch: runs on every (TN, H) tile ---------------------------
    x = span_ref[...]                                            # (TN, H) f32
    logits = jnp.dot(x, w_f_ref[...],
                     preferred_element_type=jnp.float32) + b_f_ref[...]
    # sigmoid = 1 / (1 + exp(-x));  exp + approx reciprocal live on the EUP.
    span_out_ref[...] = pl.reciprocal(1.0 + jnp.exp(-logits), approx=True)

    # ---- doc branch: tiny, done once on the first grid step ----------------
    @pl.when(pl.program_id(0) == 0)
    def _():
        q = q_ref[...]                                           # (1, D)
        ctx = ctx_ref[...]                                       # (S, D)
        d = q.shape[-1]
        inv_sqrt_d = 1.0 / math.sqrt(d)

        # scores = (q . ctx_s) / sqrt(D) without ctx.T:
        # VPU broadcast-mul + cross-lane (XLU) reduce -> (S, 1)
        scores = jnp.sum(q * ctx, axis=-1, keepdims=True) * inv_sqrt_d
        m = jnp.max(scores, axis=0, keepdims=True)               # (1, 1)
        p = jnp.exp(scores - m)                                  # (S, 1)
        p = p * pl.reciprocal(jnp.sum(p, axis=0, keepdims=True), approx=True)
        # doc_emb = sum_s p_s * ctx_s  (sublane reduce, no MXU for an M=1 GEMV)
        doc_emb = jnp.sum(p * ctx, axis=0, keepdims=True)        # (1, D)

        # event_cls + log_softmax.  Padded bias columns were set to -1e30 in
        # the wrapper, so exp() of those columns underflows to 0 and the
        # normalization only sees the 2 real classes.
        logits_e = jnp.dot(doc_emb, w_e_ref[...],
                           preferred_element_type=jnp.float32) + b_e_ref[...]
        m2 = jnp.max(logits_e, axis=-1, keepdims=True)
        z = logits_e - m2
        lse = jnp.log(jnp.sum(jnp.exp(z), axis=-1, keepdims=True))
        doc_out_ref[...] = z - lse                               # (1, 128)


# ----------------------------------------------------------------------------
# Wrapper: pads to lane-dense shapes, tiles over N, slices padding back off.
# ----------------------------------------------------------------------------
@partial(jax.jit, static_argnames=("tn_max",))
def event_table_forward(event_query, sent_context_emb, batch_span_emb,
                        w_event_cls, b_event_cls, w_field_cls, b_field_cls,
                        *, tn_max=512):
    """Returns (doc_pred_logp [1,2], span_pred_logits [N,F])."""
    if batch_span_emb.ndim == 1:
        batch_span_emb = batch_span_emb[None, :]
    S, D = sent_context_emb.shape
    N, H = batch_span_emb.shape
    E = w_event_cls.shape[1]                   # = 2
    F = w_field_cls.shape[1]

    Ep = _round_up(E, _LANE)                   # event logits 2 -> 128
    Fp = _round_up(F, _LANE)                   # fields F -> multiple of 128
    tn = min(tn_max, _round_up(N, _SUBLANE))   # span tile rows (multiple of 8)
    Np = _round_up(N, tn)

    f32 = jnp.float32
    neg = f32(-1e30)
    # Zero-pad weights; event bias padded with -1e30 masks padded classes
    # inside log_softmax (no in-kernel masking needed).  Skip copies when the
    # shapes are already lane/sublane aligned.
    w_e = (w_event_cls.astype(f32) if Ep == E else
           jnp.zeros((D, Ep), f32).at[:, :E].set(w_event_cls))
    b_e = (b_event_cls.reshape(1, E).astype(f32) if Ep == E else
           jnp.full((1, Ep), neg, f32).at[:, :E].set(b_event_cls.reshape(1, E)))
    w_f = (w_field_cls.astype(f32) if Fp == F else
           jnp.zeros((H, Fp), f32).at[:, :F].set(w_field_cls))
    b_f = (b_field_cls.reshape(1, F).astype(f32) if Fp == F else
           jnp.zeros((1, Fp), f32).at[:, :F].set(b_field_cls.reshape(1, F)))
    spans = (batch_span_emb.astype(f32) if Np == N else
             jnp.zeros((Np, H), f32).at[:N].set(batch_span_emb))
    q = event_query.astype(f32)
    ctx = sent_context_emb.astype(f32)

    grid = (Np // tn,)
    doc_pad, span_pad = pl.pallas_call(
        _fused_kernel,
        out_shape=(jax.ShapeDtypeStruct((1, Ep), f32),
                   jax.ShapeDtypeStruct((Np, Fp), f32)),
        grid_spec=pl.GridSpec(
            grid=grid,
            in_specs=[
                pl.BlockSpec((1, D), lambda i: (0, 0)),    # event_query (resident)
                pl.BlockSpec((S, D), lambda i: (0, 0)),    # sent ctx    (resident)
                pl.BlockSpec((D, Ep), lambda i: (0, 0)),   # W_event     (resident)
                pl.BlockSpec((1, Ep), lambda i: (0, 0)),   # b_event
                pl.BlockSpec((tn, H), lambda i: (i, 0)),   # span tile   (streamed)
                pl.BlockSpec((H, Fp), lambda i: (0, 0)),   # W_field     (resident)
                pl.BlockSpec((1, Fp), lambda i: (0, 0)),   # b_field
            ],
            out_specs=(
                pl.BlockSpec((1, Ep), lambda i: (0, 0)),   # doc logp (revisited)
                pl.BlockSpec((tn, Fp), lambda i: (i, 0)),  # span sigmoid tiles
            ),
        ),
        # Doc output block is revisited across the N axis -> must be
        # "arbitrary" (not "parallel") for correctness on multi-TC parts.
        compiler_params=pltpu.CompilerParams(
            dimension_semantics=("arbitrary",)),
    )(q, ctx, w_e, b_e, spans, w_f, b_f)

    return doc_pad[:, :E], span_pad[:N, :F]


# ----------------------------------------------------------------------------
# Parameter construction (mirrors the PyTorch init shapes)
# ----------------------------------------------------------------------------
def init_params(key, dim_event_query, hidden_size, num_fields):
    k_q, k_ew, k_eb, k_fw, k_fb = jax.random.split(key, 5)

    stdv_q = 1.0 / math.sqrt(dim_event_query)
    event_query = jax.random.uniform(
        k_q, (1, dim_event_query), jnp.float32, -stdv_q, stdv_q)

    # event_cls: Linear(dim_event_query, 2)  -> stored as [in, out]
    k_e = 1.0 / math.sqrt(dim_event_query)
    w_event_cls = jax.random.uniform(
        k_ew, (dim_event_query, 2), jnp.float32, -k_e, k_e)
    b_event_cls = jax.random.uniform(k_eb, (1, 2), jnp.float32, -k_e, k_e)

    # field_cls: Linear(hidden_size, num_fields) -> stored as [in, out]
    k_f = 1.0 / math.sqrt(hidden_size)
    w_field_cls = jax.random.uniform(
        k_fw, (hidden_size, num_fields), jnp.float32, -k_f, k_f)
    b_field_cls = jax.random.uniform(
        k_fb, (1, num_fields), jnp.float32, -k_f, k_f)

    return event_query, w_event_cls, b_event_cls, w_field_cls, b_field_cls


# TODO(synk): use_field_cls_mlp=True (MLP head with dropout) is not implemented;
# only the default Linear field_cls path is reproduced.
# TODO(synk): predict_span_role's thresholding / unique-role assignment is
# Python host post-processing, not a kernel.
# TODO(synk): for very large S, tile the attention over S with an online
# softmax (running max/sum/acc in VMEM scratch) instead of a resident (S, D)
# context block.

if __name__ == "__main__":
    # Small, module-consistent shapes.
    dim_event_query = 32   # query / sentence-embedding dim
    hidden_size = 32       # span-embedding dim
    num_fields = 5         # number of role fields
    seq_len = 8            # number of sentence contexts
    num_spans = 3          # number of candidate spans

    key = jax.random.PRNGKey(0)
    k_params, k_ctx, k_span = jax.random.split(key, 3)
    (event_query, w_event_cls, b_event_cls,
     w_field_cls, b_field_cls) = init_params(
        k_params, dim_event_query, hidden_size, num_fields)

    sent_context_emb = jax.random.normal(
        k_ctx, (seq_len, dim_event_query), jnp.float32)
    batch_span_emb = jax.random.normal(
        k_span, (num_spans, hidden_size), jnp.float32)

    doc_pred_logp, span_pred_logits = event_table_forward(
        event_query, sent_context_emb, batch_span_emb,
        w_event_cls, b_event_cls, w_field_cls, b_field_cls)
    jax.block_until_ready((doc_pred_logp, span_pred_logits))

    assert doc_pred_logp.shape == (1, 2)
    assert span_pred_logits.shape == (num_spans, num_fields)

    # Sanity checks vs pure-JAX reference (approx reciprocal -> relaxed atol).
    scores = (event_query @ sent_context_emb.T) / math.sqrt(dim_event_query)
    p = jax.nn.softmax(scores, axis=-1)
    doc_emb = p @ sent_context_emb
    ref_doc = jax.nn.log_softmax(doc_emb @ w_event_cls + b_event_cls, axis=-1)
    ref_span = jax.nn.sigmoid(batch_span_emb @ w_field_cls + b_field_cls)
    assert jnp.allclose(doc_pred_logp, ref_doc, atol=5e-3), (
        jnp.max(jnp.abs(doc_pred_logp - ref_doc)))
    assert jnp.allclose(span_pred_logits, ref_span, atol=5e-3), (
        jnp.max(jnp.abs(span_pred_logits - ref_span)))

    print("KERNEL_OK")
</pallas_src>

<mosaic_0001>
module attributes {stable_mosaic.version = 11 : i64} {
  func.func @_fused_kernel(%arg0: i32, %arg1: memref<1x32xf32, #tpu.memory_space<vmem>>, %arg2: memref<8x32xf32, #tpu.memory_space<vmem>>, %arg3: memref<32x128xf32, #tpu.memory_space<vmem>>, %arg4: memref<1x128xf32, #tpu.memory_space<vmem>>, %arg5: memref<8x32xf32, #tpu.memory_space<vmem>>, %arg6: memref<32x128xf32, #tpu.memory_space<vmem>>, %arg7: memref<1x128xf32, #tpu.memory_space<vmem>>, %arg8: memref<1x128xf32, #tpu.memory_space<vmem>>, %arg9: memref<8x128xf32, #tpu.memory_space<vmem>>) attributes {dimension_semantics = [#tpu.dimension_semantics<arbitrary>], iteration_bounds = array<i64: 1>, scalar_prefetch = 0 : i64, scratch_operands = 0 : i64, tpu.core_type = #tpu.core_type<tc>, window_params = [{pipeline_mode = #tpu.pipeline_mode<synchronous>, transform_indices = @transform_0, window_bounds = array<i64: 1, 32>}, {pipeline_mode = #tpu.pipeline_mode<synchronous>, transform_indices = @transform_1, window_bounds = array<i64: 8, 32>}, {pipeline_mode = #tpu.pipeline_mode<synchronous>, transform_indices = @transform_2, window_bounds = array<i64: 32, 128>}, {pipeline_mode = #tpu.pipeline_mode<synchronous>, transform_indices = @transform_3, window_bounds = array<i64: 1, 128>}, {transform_indices = @transform_4, window_bounds = array<i64: 8, 32>}, {pipeline_mode = #tpu.pipeline_mode<synchronous>, transform_indices = @transform_5, window_bounds = array<i64: 32, 128>}, {pipeline_mode = #tpu.pipeline_mode<synchronous>, transform_indices = @transform_6, window_bounds = array<i64: 1, 128>}, {pipeline_mode = #tpu.pipeline_mode<synchronous>, transform_indices = @transform_7, window_bounds = array<i64: 1, 128>}, {transform_indices = @transform_8, window_bounds = array<i64: 8, 128>}]} {
    %c0 = arith.constant 0 : index
    %c0_0 = arith.constant 0 : index
    %0 = vector.load %arg5[%c0, %c0_0] : memref<8x32xf32, #tpu.memory_space<vmem>>, vector<8x32xf32>
    %c0_1 = arith.constant 0 : index
    %c0_2 = arith.constant 0 : index
    %1 = vector.load %arg6[%c0_1, %c0_2] : memref<32x128xf32, #tpu.memory_space<vmem>>, vector<32x128xf32>
    %cst = arith.constant dense<0.000000e+00> : vector<8x128xf32>
    %2 = tpu.matmul %0, %1, %cst {dimension_numbers = #tpu.dot_dimension_numbers<[1], [0], [0], [1], [0, 0, 1, 1], [], []>} : vector<8x32xf32>, vector<32x128xf32>, vector<8x128xf32> -> vector<8x128xf32>
    %c0_3 = arith.constant 0 : index
    %c0_4 = arith.constant 0 : index
    %3 = vector.load %arg7[%c0_3, %c0_4] : memref<1x128xf32, #tpu.memory_space<vmem>>, vector<1x128xf32>
    %4 = vector.broadcast %3 : vector<1x128xf32> to vector<8x128xf32>
    %5 = arith.addf %2, %4 : vector<8x128xf32>
    %cst_5 = arith.constant 0.000000e+00 : f32
    %6 = vector.broadcast %cst_5 : f32 to vector<8x128xf32>
    %7 = arith.subf %6, %5 : vector<8x128xf32>
    %8 = math.exp %7 : vector<8x128xf32>
    %cst_6 = arith.constant 1.000000e+00 : f32
    %9 = vector.broadcast %cst_6 : f32 to vector<8x128xf32>
    %10 = arith.addf %9, %8 : vector<8x128xf32>
    %11 = tpu.reciprocal %10 {approx = true} : vector<8x128xf32> -> vector<8x128xf32>
    %c0_7 = arith.constant 0 : index
    %c0_8 = arith.constant 0 : index
    %12 = vector.load %arg9[%c0_7, %c0_8] : memref<8x128xf32, #tpu.memory_space<vmem>>, vector<8x128xf32>
    tpu.vector_store %arg9[%c0_7, %c0_8], %11 {strides = array<i32>} : memref<8x128xf32, #tpu.memory_space<vmem>>, vector<8x128xf32>,
    %c0_i32 = arith.constant 0 : i32
    %13 = arith.cmpi eq, %arg0, %c0_i32 : i32
    %14 = arith.extui %13 : i1 to i32
    %c0_i32_9 = arith.constant 0 : i32
    %15 = arith.cmpi ne, %14, %c0_i32_9 : i32
    scf.if %15 {
      %c0_10 = arith.constant 0 : index
      %c0_11 = arith.constant 0 : index
      %16 = vector.load %arg1[%c0_10, %c0_11] : memref<1x32xf32, #tpu.memory_space<vmem>>, vector<1x32xf32>
      %c0_12 = arith.constant 0 : index
      %c0_13 = arith.constant 0 : index
      %17 = vector.load %arg2[%c0_12, %c0_13] : memref<8x32xf32, #tpu.memory_space<vmem>>, vector<8x32xf32>
      %18 = vector.broadcast %16 : vector<1x32xf32> to vector<8x32xf32>
      %19 = arith.mulf %18, %17 : vector<8x32xf32>
      %cst_14 = arith.constant dense<0.000000e+00> : vector<8xf32>
      %20 = vector.multi_reduction <add>, %19, %cst_14 [1] : vector<8x32xf32> to vector<8xf32>
      %21 = vector.shape_cast %20 : vector<8xf32> to vector<8x1xf32>
      %cst_15 = arith.constant 0.176776692 : f32
      %22 = vector.broadcast %cst_15 : f32 to vector<8x1xf32>
      %23 = arith.mulf %21, %22 : vector<8x1xf32>
      %cst_16 = arith.constant dense<0xFF800000> : vector<1xf32>
      %24 = vector.multi_reduction <maximumf>, %23, %cst_16 [0] : vector<8x1xf32> to vector<1xf32>
      %25 = vector.shape_cast %24 : vector<1xf32> to vector<1x1xf32>
      %26 = vector.broadcast %25 : vector<1x1xf32> to vector<8x1xf32>
      %27 = arith.subf %23, %26 : vector<8x1xf32>
      %28 = math.exp %27 : vector<8x1xf32>
      %cst_17 = arith.constant dense<0.000000e+00> : vector<1xf32>
      %29 = vector.multi_reduction <add>, %28, %cst_17 [0] : vector<8x1xf32> to vector<1xf32>
      %30 = vector.shape_cast %29 : vector<1xf32> to vector<1x1xf32>
      %31 = tpu.reciprocal %30 {approx = true} : vector<1x1xf32> -> vector<1x1xf32>
      %32 = vector.broadcast %31 : vector<1x1xf32> to vector<8x1xf32>
      %33 = arith.mulf %28, %32 : vector<8x1xf32>
      %34 = vector.broadcast %33 : vector<8x1xf32> to vector<8x32xf32>
      %35 = arith.mulf %34, %17 : vector<8x32xf32>
      %cst_18 = arith.constant dense<0.000000e+00> : vector<32xf32>
      %36 = vector.multi_reduction <add>, %35, %cst_18 [0] : vector<8x32xf32> to vector<32xf32>
      %37 = vector.shape_cast %36 : vector<32xf32> to vector<1x32xf32>
      %c0_19 = arith.constant 0 : index
      %c0_20 = arith.constant 0 : index
      %38 = vector.load %arg3[%c0_19, %c0_20] : memref<32x128xf32, #tpu.memory_space<vmem>>, vector<32x128xf32>
      %cst_21 = arith.constant dense<0.000000e+00> : vector<1x128xf32>
      %39 = tpu.matmul %37, %38, %cst_21 {dimension_numbers = #tpu.dot_dimension_numbers<[1], [0], [0], [1], [0, 0, 1, 1], [], []>} : vector<1x32xf32>, vector<32x128xf32>, vector<1x128xf32> -> vector<1x128xf32>
      %c0_22 = arith.constant 0 : index
      %c0_23 = arith.constant 0 : index
      %40 = vector.load %arg4[%c0_22, %c0_23] : memref<1x128xf32, #tpu.memory_space<vmem>>, vector<1x128xf32>
      %41 = arith.addf %39, %40 : vector<1x128xf32>
      %cst_24 = arith.constant dense<0xFF800000> : vector<1xf32>
      %42 = vector.multi_reduction <maximumf>, %41, %cst_24 [1] : vector<1x128xf32> to vector<1xf32>
      %43 = vector.shape_cast %42 : vector<1xf32> to vector<1x1xf32>
      %44 = vector.broadcast %43 : vector<1x1xf32> to vector<1x128xf32>
      %45 = arith.subf %41, %44 : vector<1x128xf32>
      %46 = math.exp %45 : vector<1x128xf32>
      %cst_25 = arith.constant dense<0.000000e+00> : vector<1xf32>
      %47 = vector.multi_reduction <add>, %46, %cst_25 [1] : vector<1x128xf32> to vector<1xf32>
      %48 = vector.shape_cast %47 : vector<1xf32> to vector<1x1xf32>
      %49 = math.log %48 : vector<1x1xf32>
      %50 = vector.broadcast %49 : vector<1x1xf32> to vector<1x128xf32>
      %51 = arith.subf %45, %50 : vector<1x128xf32>
      %c0_26 = arith.constant 0 : index
      %c0_27 = arith.constant 0 : index
      %52 = vector.load %arg8[%c0_26, %c0_27] : memref<1x128xf32, #tpu.memory_space<vmem>>, vector<1x128xf32>
      tpu.vector_store %arg8[%c0_26, %c0_27], %51 {strides = array<i32>} : memref<1x128xf32, #tpu.memory_space<vmem>>, vector<1x128xf32>,
    } else {
    }
    return
  }
  func.func @transform_0(%arg0: i32) -> (i32, i32) {
    %c0_i32 = arith.constant 0 : i32
    %c0_i32_0 = arith.constant 0 : i32
    %c0_i32_1 = arith.constant 0 : i32
    return %c0_i32, %c0_i32_0 : i32, i32
  }
  func.func @transform_1(%arg0: i32) -> (i32, i32) {
    %c0_i32 = arith.constant 0 : i32
    %c0_i32_0 = arith.constant 0 : i32
    %c0_i32_1 = arith.constant 0 : i32
    return %c0_i32, %c0_i32_0 : i32, i32
  }
  func.func @transform_2(%arg0: i32) -> (i32, i32) {
    %c0_i32 = arith.constant 0 : i32
    %c0_i32_0 = arith.constant 0 : i32
    %c0_i32_1 = arith.constant 0 : i32
    return %c0_i32, %c0_i32_0 : i32, i32
  }
  func.func @transform_3(%arg0: i32) -> (i32, i32) {
    %c0_i32 = arith.constant 0 : i32
    %c0_i32_0 = arith.constant 0 : i32
    %c0_i32_1 = arith.constant 0 : i32
    return %c0_i32, %c0_i32_0 : i32, i32
  }
  func.func @transform_4(%arg0: i32) -> (i32, i32) {
    %c0_i32 = arith.constant 0 : i32
    %c0_i32_0 = arith.constant 0 : i32
    return %arg0, %c0_i32 : i32, i32
  }
  func.func @transform_5(%arg0: i32) -> (i32, i32) {
    %c0_i32 = arith.constant 0 : i32
    %c0_i32_0 = arith.constant 0 : i32
    %c0_i32_1 = arith.constant 0 : i32
    return %c0_i32, %c0_i32_0 : i32, i32
  }
  func.func @transform_6(%arg0: i32) -> (i32, i32) {
    %c0_i32 = arith.constant 0 : i32
    %c0_i32_0 = arith.constant 0 : i32
    %c0_i32_1 = arith.constant 0 : i32
    return %c0_i32, %c0_i32_0 : i32, i32
  }
  func.func @transform_7(%arg0: i32) -> (i32, i32) {
    %c0_i32 = arith.constant 0 : i32
    %c0_i32_0 = arith.constant 0 : i32
    %c0_i32_1 = arith.constant 0 : i32
    return %c0_i32, %c0_i32_0 : i32, i32
  }
  func.func @transform_8(%arg0: i32) -> (i32, i32) {
    %c0_i32 = arith.constant 0 : i32
    %c0_i32_0 = arith.constant 0 : i32
    return %arg0, %c0_i32 : i32, i32
  }
}

</mosaic_0001>

<bundles_post_ra>
// kernel: event_table_forward.1
= control target key start
LH: loop header
LB: loop body
LE: loop exit
PB: predicated region body
PF: predicated region fallthrough
CT: control target
= control target key end

     0   :  { %vm41_vm0 = vcmask 261120   ;;  %s470_s0 = inlined_call_operand.vmem [shape: f32[1,32], index: 0, kind: input, shape index: {}]   ;;  %s471_s1 = inlined_call_operand.vmem [shape: f32[8,32], index: 1, kind: input, shape index: {}]   ;;  %s472_s2 = inlined_call_operand.vmem [shape: f32[32,128], index: 2, kind: input, shape index: {}]   ;;  %s473_s3 = inlined_call_operand.vmem [shape: f32[1,128], index: 3, kind: input, shape index: {}]   ;;  %s474_s4 = inlined_call_operand.vmem [shape: f32[8,32], index: 4, kind: input, shape index: {}]   ;;  %s475_s5 = inlined_call_operand.vmem [shape: f32[32,128], index: 5, kind: input, shape index: {}]   ;;  %s476_s6 = inlined_call_operand.vmem [shape: f32[1,128], index: 6, kind: input, shape index: {}]   ;;  %s477_s7 = inlined_call_operand.hbm [shape: f32[1,128], index: 7, kind: output, shape index: {0}]   ;;  %s478_s8 = inlined_call_operand.vmem [shape: f32[8,128], index: 8, kind: output, shape index: {1}]  }
   0x1   :  { %v275_v0 = vld [vmem:[%s470_s0] ss:$0 sm:$0xff] }
   0x2   :  { %v126_v1 = vld [vmem:[%s471_s1] sm:$0xff] }
   0x3   :  { %14 = vsyncpa [#allocation3], 0  ;;  %v133_v2 = vmul.f32 %v275_v0, %v126_v1  ;;  %v163_v4 = vld [vmem:[%s472_s2] sm:$0xff]  ;;  %v164_v5 = vld [vmem:[%s472_s2 + $0x8] sm:$0xff]  ;;  %v361_v7 = vmov 0.0|0.0   ;;  %vm362_vm1 = vmmov 0  }
   0x4   :  { %v165_v6 = vld [vmem:[%s472_s2 + $0x10] sm:$0xff]  ;;  %315 = vmatprep.subr.bf16.mxu1 %v361_v7  ;;  %v316_v8 = vpack.c.bf16 %v164_v5, %v163_v4  ;;  %v166_v9 = vld [vmem:[%s472_s2 + $0x18] sm:$0xff]  ;;  %v363_v10 = vmov 0.0   ;;  %309 = vmatprep.subr.bf16.mxu0 %v361_v7  ;;  %v30_v39 = vld [vmem:[%s475_s5] sm:$0xff]  ;;  %vm241_vm2 = vcmask 1040384  }
   0x5   :  { %v134_v3 = vsel %vm41_vm0, %v133_v2, 0.0  ;;  %306 = vmatprep.mubr.msk.f32.mxu1 %vm362_vm1, %v363_v10  ;;  %295 = vmatprep.mubr.msk.f32.mxu0 %vm362_vm1, %v363_v10  ;;  %v319_v11 = vpack.c.bf16 %v166_v9, %v165_v6  ;;  %v31_v40 = vld [vmem:[%s475_s5 + $0x8] sm:$0xff]  ;;  %v32_v41 = vld [vmem:[%s475_s5 + $0x10] sm:$0xff]  ;;  %v33_v43 = vld [vmem:[%s475_s5 + $0x18] sm:$0xff] }
   0x6   :  { %135 = vadd.xlane.f32.xlu0 %v134_v3  ;;  %317 = vmatpush3.bf16.msra.mxu1 %v316_v8  ;;  %v310_v42 = vpack.c.bf16 %v31_v40, %v30_v39  ;;  %v313_v44 = vpack.c.bf16 %v33_v43, %v32_v41  ;;  %v29_v45 = vld [vmem:[%s474_s4] sm:$0xff] }
   0x7   :  { %318 = vmatprep.subr.bf16.mxu1 %v361_v7  ;;  %v167_v46 = vld [vmem:[%s473_s3] sm:$0x1] }
   0x8   :  { %311 = vmatpush3.bf16.msra.mxu0 %v310_v42  ;;  %v273_v51 = vld [vmem:[%s476_s6] ss:$0 sm:$0xff]  ;;  %s364_s6 = smov [#allocation2]  }
   0x9   :  { %312 = vmatprep.subr.bf16.mxu0 %v361_v7  ;;  %s261_s27 = sshll.u32 %s364_s6, 4  ;;  %s262_s27 = int_to_ptr.vmem [resolvable:$true] %s261_s27 }
   0xa   :  { %320 = vmatpush3.bf16.msra.mxu1 %v319_v11  ;;  %s337_s28 = scalar_lea.vmem %s262_s27, 16  ;;  %p342_p1 = scmp.lt.s32.totalorder %s262_s27, %s262_s27 }
   0xb   :  { %p338_p0 = scmp.ne.s32.totalorder %s262_s27, %s337_s28 }
   0xc   :  { %314 = vmatpush3.bf16.msra.mxu0 %v313_v44 }
   0xf   :  { %296 = vmatmul.mubr.msk.f32.vlgmr.msra.gmra.mrb[0].mxu0 %vm41_vm0, %v29_v45 }
  0x93   :  { %v136_v12 = vpop.xlane.xlu0 %135 }
  0x94   :  { %v137_v13 = vmul.f32 0.17677669, %v136_v12 }
  0x96   :  { %v138_v14 = vrot.slane %v137_v13, 4 }
  0x98   :  { %v139_v15 = vmax.f32 %v137_v13, %v138_v14 }
  0x9a   :  { %v140_v16 = vrot.slane %v139_v15, 2 }
  0x9c   :  { %v141_v17 = vmax.f32 %v139_v15, %v140_v16 }
  0x9e   :  { %v142_v18 = vrot.slane %v141_v17, 1 }
  0xa0   :  { %v143_v19 = vmax.f32 %v141_v17, %v142_v18 }
  0xa2   :  { %v144_v20 = vsub.f32 %v137_v13, %v143_v19 }
  0xa4   :  { %v145_v21 = vmul.f32 1.442695, %v144_v20 }
  0xa6   :  { %325 = vpow2.f32 %v145_v21 }
  0xb0   :  { %v326_v22 = vpop.eup %325 }
  0xb1   :  { %v147_v23 = vrot.slane %v326_v22, 4 }
  0xb3   :  { %v148_v24 = vadd.f32 %v326_v22, %v147_v23 }
  0xb5   :  { %v149_v25 = vrot.slane %v148_v24, 2 }
  0xb7   :  { %v150_v26 = vadd.f32 %v149_v25, %v148_v24 }
  0xb9   :  { %v151_v27 = vrot.slane %v150_v26, 1 }
  0xbb   :  { %v152_v28 = vadd.f32 %v151_v27, %v150_v26 }
  0xbd   :  { %327 = vrcp.f32 %v152_v28 }
  0xc7   :  { %v328_v29 = vpop.eup %327 }
  0xc8   :  { %v154_v30 = vmul.f32 %v328_v29, %v326_v22 }
  0xca   :  { %v155_v31 = vmul.f32 %v154_v30, %v126_v1 }
  0xcc   :  { %v156_v32 = vsel %vm41_vm0, %v155_v31, 0.0 }
  0xcd   :  { %v157_v33 = vrot.slane %v156_v32, 4 }
  0xcf   :  { %v158_v34 = vadd.f32 %v157_v33, %v156_v32 }
  0xd1   :  { %v159_v35 = vrot.slane %v158_v34, 2 }
  0xd3   :  { %v160_v36 = vadd.f32 %v159_v35, %v158_v34 }
  0xd5   :  { %v161_v37 = vrot.slane %v160_v36, 1 }
  0xd7   :  { %v162_v38 = vadd.f32 %v161_v37, %v160_v36 }
  0xd9   :  { %307 = vmatmul.mubr.msk.f32.vlgmr.msra.gmra.mrb[0].mxu1 %vm41_vm0, %v162_v38 }
  0xe2   :  { %v111_v52 = vpop.f32.mrb[0].mxu0 }
  0xe3   :  { %v112_v53 = vadd.f32 %v273_v51, %v111_v52  ;;  %v297_v54 = vpop.f32.mrb[1].mxu0 }
  0xe5   :  { %v115_v55 = vsub.f32 0.0, %v112_v53 }
  0xe7   :  { %v116_v56 = vmul.f32 1.442695, %v115_v55 }
  0xe9   :  { %329 = vpow2.f32 %v116_v56 }
  0xf3   :  { %v330_v57 = vpop.eup %329 }
  0xf4   :  { %v118_v58 = vadd.f32 1.0, %v330_v57 }
  0xf6   :  { %331 = vrcp.f32 %v118_v58 }
 0x100   :  { %v332_v59 = vpop.eup %331 }
 0x101   :  { %120 = vst [vmem:[%s478_s8] sm:$0xff] %v332_v59  ;;  %s341_s8 = scalar_lea.vmem %s262_s27, 32 }
 0x102   :  { %p343_p2 = scmp.lt.s32.totalorder %s341_s8, %s337_s28 }
 0x104   :  { %p344_p3 = por %p343_p2, %p342_p1 }
 0x106   :  { %p345_p4 = pnand %p344_p3, %p338_p0 }
 0x1ac   :  { %v237_v47 = vpop.f32.mrb[0].mxu1 }
 0x1ad   :  { %v238_v48 = vadd.f32 %v237_v47, %v167_v46  ;;  %v308_v49 = vpop.f32.mrb[1].mxu1 }
 0x1af   :  { %v242_v50 = vsel %vm241_vm2, %v238_v48, -inf }
 0x1b0   :  { %243 = vmax.xlane.f32.xlu0 %v242_v50 }
 0x23d   :  { %v244_v60 = vpop.xlane.xlu0 %243 }
 0x23e   :  { %v245_v61 = vsub.f32 %v238_v48, %v244_v60 }
 0x240   :  { %v246_v62 = vmul.f32 1.442695, %v245_v61 }
 0x242   :  { %333 = vpow2.f32 %v246_v62 }
 0x24c   :  { %v334_v63 = vpop.eup %333 }
 0x24d   :  { %v248_v0 = vsel %vm241_vm2, %v334_v63, 0.0 }
 0x24e   :  { %249 = vadd.xlane.f32.xlu1 %v248_v0 }
 0x2db   :  { %v250_v1 = vpop.xlane.xlu1 %249 }
 0x2dc   :  { %335 = vlog2.f32 %v250_v1 }
 0x2e6   :  { %v336_v2 = vpop.eup %335 }
 0x2e7   :  { %v252_v3 = vmul.f32 0.6931472, %v336_v2 }
 0x2e9   :  { %v253_v4 = vsub.f32 %v245_v61, %v252_v3 }
 0x2eb   :  { %254 = vst [vmem:[#allocation2] sm:$0x1] %v253_v4 }
 0x2ec   :  { %348 = shalt.err (!%p345_p4)
}
 0x2ed   :  { %s349_s9 = scalar_lea.hbm %s477_s7, 16 }
 0x2ee   :  { %p350_p5 = scmp.ne.s32.totalorder %s477_s7, %s349_s9  ;;  %p353_p6 = scmp.lt.u32.totalorder %s349_s9, %s477_s7 }
 0x2f0   :  { %p355_p7 = pnand %p353_p6, %p350_p5 }
 0x2f2   :  { %358 = shalt.err (!%p355_p7)
}
 0x2f3   :  { %264 = dma.vmem_to_hbm [thread:$0]  %s262_s27, 16, %s477_s7, [#allocation3]  }
 0x2f4   :  { %359 = dma.done.wait [#allocation3], 16  }
 0x2f5   :  { %360 = vsyncadd [#allocation3], 4294967280 }
 0x2f6   :  { %272 = vsyncpa [#allocation3], 1 }

</bundles_post_ra>
